<compile_context>
chip_gen: v7x
topology: tpu7x:2x2x1
jax: 0.10.0
libtpu: 0.0.40
codegen_flags: <defaults>
</compile_context>

<pallas_src>
import jax
import jax.numpy as jnp
from jax.experimental import pallas as pl
from jax.experimental.pallas import tpu as pltpu


def gru_kernel(emb_ref, wih_ref, whh_ref, bih_ref, bhh_ref, out_ref):
    """Single-invocation GRU over the whole sequence.

    emb_ref : [S*B, H]  time-major embedded inputs, flattened over (t, b)
    wih_ref : [H, 3H]   W_ih^T (gate order r, z, n)
    whh_ref : [H, 3H]   W_hh^T
    bih_ref : [1, 3H]
    bhh_ref : [1, 3H]
    out_ref : [S, B, H] time-major GRU outputs
    """
    S, B, H = out_ref.shape

    bih = bih_ref[...]                                   # [1, 3H]
    bhh = bhh_ref[...]                                   # [1, 3H]
    whh = whh_ref[...]                                   # [H, 3H]

    # Hoisted input projection: one MXU call covering ALL timesteps.
    gi_all = jnp.dot(emb_ref[...], wih_ref[...],
                     preferred_element_type=jnp.float32)  # [S*B, 3H]

    # Per-gate terms; fold the r/z hidden biases in here (they are plain adds).
    # The n-gate hidden bias must stay inside r * (...), per PyTorch semantics.
    gi_r = gi_all[:, :H] + (bih[:, :H] + bhh[:, :H])          # [S*B, H]
    gi_z = gi_all[:, H:2 * H] + (bih[:, H:2 * H] + bhh[:, H:2 * H])
    gi_n = gi_all[:, 2 * H:] + bih[:, 2 * H:]
    bhh_n = bhh[:, 2 * H:]                                    # [1, H]

    h = jnp.zeros((B, H), jnp.float32)
    # Fully unrolled time recurrence (S is small and static). Only the hidden
    # projection + gate elementwise remain on the sequential critical path.
    for t in range(S):
        lo, hi = t * B, (t + 1) * B
        gh = jnp.dot(h, whh, preferred_element_type=jnp.float32)  # [B, 3H]
        r = jax.nn.sigmoid(gi_r[lo:hi] + gh[:, :H])
        z = jax.nn.sigmoid(gi_z[lo:hi] + gh[:, H:2 * H])
        n = jnp.tanh(gi_n[lo:hi] + r * (gh[:, 2 * H:] + bhh_n))
        h = (1.0 - z) * n + z * h
        out_ref[t] = h.astype(out_ref.dtype)


def encoder_forward(x, emb_table, w_ih, w_hh, b_ih, b_hh):
    """x: int32 [B, S] token ids.  Returns (outputs [B,S,H], hidden [1,B,H])."""
    B, S = x.shape
    H = emb_table.shape[1]

    # Glue: embedding lookup + time-major flatten (layout plumbing in plain JAX).
    embedded = jnp.take(emb_table, x, axis=0)                    # [B, S, H]
    emb_flat = jnp.transpose(embedded, (1, 0, 2)).reshape(S * B, H)  # [S*B, H]

    wih_t = w_ih.T                                               # [H, 3H]
    whh_t = w_hh.T                                               # [H, 3H]
    bih = b_ih.reshape(1, 3 * H)
    bhh = b_hh.reshape(1, 3 * H)

    flops = 2 * (S * B) * H * (3 * H) * 2            # input + hidden projections
    transcendentals = 3 * S * B * H                  # 2 sigmoid + 1 tanh / elem
    bytes_accessed = 4 * (2 * S * B * H              # emb in + outputs
                          + 2 * H * 3 * H            # weights
                          + 2 * 3 * H)               # biases

    outputs_tm = pl.pallas_call(
        gru_kernel,
        out_shape=jax.ShapeDtypeStruct((S, B, H), jnp.float32),
        grid=(1,),                                    # single kernel invocation
        in_specs=[
            pl.BlockSpec((S * B, H), lambda i: (0, 0)),     # embedded sequence
            pl.BlockSpec((H, 3 * H), lambda i: (0, 0)),     # W_ih^T
            pl.BlockSpec((H, 3 * H), lambda i: (0, 0)),     # W_hh^T
            pl.BlockSpec((1, 3 * H), lambda i: (0, 0)),     # b_ih
            pl.BlockSpec((1, 3 * H), lambda i: (0, 0)),     # b_hh
        ],
        out_specs=pl.BlockSpec((S, B, H), lambda i: (0, 0, 0)),
        cost_estimate=pl.CostEstimate(
            flops=flops,
            transcendentals=transcendentals,
            bytes_accessed=bytes_accessed),
        compiler_params=pltpu.CompilerParams(
            dimension_semantics=("arbitrary",)),
    )(emb_flat, wih_t, whh_t, bih, bhh)

    outputs = jnp.transpose(outputs_tm, (1, 0, 2))   # [B, S, H] (batch_first)
    hidden = outputs_tm[-1][None]                    # [1, B, H] == final h
    return outputs, hidden


def _reference_gru(x, emb_table, w_ih, w_hh, b_ih, b_hh):
    """Pure-JAX reference (PyTorch GRU semantics) for a sanity check."""
    B, S = x.shape
    H = emb_table.shape[1]
    emb = jnp.take(emb_table, x, axis=0)             # [B, S, H]

    def step(h, x_t):
        gi = x_t @ w_ih.T + b_ih
        gh = h @ w_hh.T + b_hh
        i_r, i_z, i_n = gi[:, :H], gi[:, H:2 * H], gi[:, 2 * H:]
        h_r, h_z, h_n = gh[:, :H], gh[:, H:2 * H], gh[:, 2 * H:]
        r = jax.nn.sigmoid(i_r + h_r)
        z = jax.nn.sigmoid(i_z + h_z)
        n = jnp.tanh(i_n + r * h_n)
        h_new = (1.0 - z) * n + z * h
        return h_new, h_new

    h0 = jnp.zeros((B, H), jnp.float32)
    h_last, outs = jax.lax.scan(step, h0, jnp.transpose(emb, (1, 0, 2)))
    return jnp.transpose(outs, (1, 0, 2)), h_last[None]


if __name__ == "__main__":
    # Small shapes consistent with the module's forward:
    #   x: int token ids [batch=2, seq=8], vocab (input_dim)=16, hidden_dim=32
    B, S, V, H = 2, 8, 16, 32

    key = jax.random.PRNGKey(0)
    k_emb, k_wih, k_whh, k_bih, k_bhh, k_x = jax.random.split(key, 6)

    bound = 1.0 / jnp.sqrt(H)
    emb_table = jax.random.normal(k_emb, (V, H), jnp.float32)          # nn.Embedding init
    w_ih = jax.random.uniform(k_wih, (3 * H, H), jnp.float32, -bound, bound)
    w_hh = jax.random.uniform(k_whh, (3 * H, H), jnp.float32, -bound, bound)
    b_ih = jax.random.uniform(k_bih, (3 * H,), jnp.float32, -bound, bound)
    b_hh = jax.random.uniform(k_bhh, (3 * H,), jnp.float32, -bound, bound)

    x = jax.random.randint(k_x, (B, S), 0, V, jnp.int32)

    outputs, hidden = jax.jit(encoder_forward)(x, emb_table, w_ih, w_hh, b_ih, b_hh)
    jax.block_until_ready((outputs, hidden))

    assert outputs.shape == (B, S, H)
    assert hidden.shape == (1, B, H)

    ref_out, ref_hid = _reference_gru(x, emb_table, w_ih, w_hh, b_ih, b_hh)
    assert jnp.allclose(outputs, ref_out, atol=1e-3, rtol=1e-3)
    assert jnp.allclose(hidden, ref_hid, atol=1e-3, rtol=1e-3)

    print("KERNEL_OK")
</pallas_src>

<mosaic_0001>
module attributes {stable_mosaic.version = 11 : i64} {
  func.func @gru_kernel(%arg0: i32, %arg1: memref<16x32xf32, #tpu.memory_space<vmem>>, %arg2: memref<32x96xf32, #tpu.memory_space<vmem>>, %arg3: memref<32x96xf32, #tpu.memory_space<vmem>>, %arg4: memref<1x96xf32, #tpu.memory_space<vmem>>, %arg5: memref<1x96xf32, #tpu.memory_space<vmem>>, %arg6: memref<8x2x32xf32, #tpu.memory_space<vmem>>) attributes {dimension_semantics = [#tpu.dimension_semantics<arbitrary>], iteration_bounds = array<i64: 1>, scalar_prefetch = 0 : i64, scratch_operands = 0 : i64, tpu.core_type = #tpu.core_type<tc>, window_params = [{pipeline_mode = #tpu.pipeline_mode<synchronous>, transform_indices = @transform_0, window_bounds = array<i64: 16, 32>}, {pipeline_mode = #tpu.pipeline_mode<synchronous>, transform_indices = @transform_1, window_bounds = array<i64: 32, 96>}, {pipeline_mode = #tpu.pipeline_mode<synchronous>, transform_indices = @transform_2, window_bounds = array<i64: 32, 96>}, {pipeline_mode = #tpu.pipeline_mode<synchronous>, transform_indices = @transform_3, window_bounds = array<i64: 1, 96>}, {pipeline_mode = #tpu.pipeline_mode<synchronous>, transform_indices = @transform_4, window_bounds = array<i64: 1, 96>}, {pipeline_mode = #tpu.pipeline_mode<synchronous>, transform_indices = @transform_5, window_bounds = array<i64: 8, 2, 32>}]} {
    %c0 = arith.constant 0 : index
    %c0_0 = arith.constant 0 : index
    %0 = vector.load %arg4[%c0, %c0_0] : memref<1x96xf32, #tpu.memory_space<vmem>>, vector<1x96xf32>
    %c0_1 = arith.constant 0 : index
    %c0_2 = arith.constant 0 : index
    %1 = vector.load %arg5[%c0_1, %c0_2] : memref<1x96xf32, #tpu.memory_space<vmem>>, vector<1x96xf32>
    %c0_3 = arith.constant 0 : index
    %c0_4 = arith.constant 0 : index
    %2 = vector.load %arg3[%c0_3, %c0_4] : memref<32x96xf32, #tpu.memory_space<vmem>>, vector<32x96xf32>
    %c0_5 = arith.constant 0 : index
    %c0_6 = arith.constant 0 : index
    %3 = vector.load %arg1[%c0_5, %c0_6] : memref<16x32xf32, #tpu.memory_space<vmem>>, vector<16x32xf32>
    %c0_7 = arith.constant 0 : index
    %c0_8 = arith.constant 0 : index
    %4 = vector.load %arg2[%c0_7, %c0_8] : memref<32x96xf32, #tpu.memory_space<vmem>>, vector<32x96xf32>
    %cst = arith.constant dense<0.000000e+00> : vector<16x96xf32>
    %5 = tpu.matmul %3, %4, %cst {dimension_numbers = #tpu.dot_dimension_numbers<[1], [0], [0], [1], [0, 0, 1, 1], [], []>} : vector<16x32xf32>, vector<32x96xf32>, vector<16x96xf32> -> vector<16x96xf32>
    %6 = vector.extract_strided_slice %5 {offsets = [0, 0], sizes = [16, 32], strides = [1, 1]} : vector<16x96xf32> to vector<16x32xf32>
    %7 = vector.extract_strided_slice %0 {offsets = [0, 0], sizes = [1, 32], strides = [1, 1]} : vector<1x96xf32> to vector<1x32xf32>
    %8 = vector.extract_strided_slice %1 {offsets = [0, 0], sizes = [1, 32], strides = [1, 1]} : vector<1x96xf32> to vector<1x32xf32>
    %9 = arith.addf %7, %8 : vector<1x32xf32>
    %10 = vector.broadcast %9 : vector<1x32xf32> to vector<16x32xf32>
    %11 = arith.addf %6, %10 : vector<16x32xf32>
    %12 = vector.extract_strided_slice %5 {offsets = [0, 32], sizes = [16, 32], strides = [1, 1]} : vector<16x96xf32> to vector<16x32xf32>
    %13 = vector.extract_strided_slice %0 {offsets = [0, 32], sizes = [1, 32], strides = [1, 1]} : vector<1x96xf32> to vector<1x32xf32>
    %14 = vector.extract_strided_slice %1 {offsets = [0, 32], sizes = [1, 32], strides = [1, 1]} : vector<1x96xf32> to vector<1x32xf32>
    %15 = arith.addf %13, %14 : vector<1x32xf32>
    %16 = vector.broadcast %15 : vector<1x32xf32> to vector<16x32xf32>
    %17 = arith.addf %12, %16 : vector<16x32xf32>
    %18 = vector.extract_strided_slice %5 {offsets = [0, 64], sizes = [16, 32], strides = [1, 1]} : vector<16x96xf32> to vector<16x32xf32>
    %19 = vector.extract_strided_slice %0 {offsets = [0, 64], sizes = [1, 32], strides = [1, 1]} : vector<1x96xf32> to vector<1x32xf32>
    %20 = vector.broadcast %19 : vector<1x32xf32> to vector<16x32xf32>
    %21 = arith.addf %18, %20 : vector<16x32xf32>
    %22 = vector.extract_strided_slice %1 {offsets = [0, 64], sizes = [1, 32], strides = [1, 1]} : vector<1x96xf32> to vector<1x32xf32>
    %cst_9 = arith.constant 0.000000e+00 : f32
    %23 = vector.broadcast %cst_9 : f32 to vector<2x32xf32>
    %cst_10 = arith.constant dense<0.000000e+00> : vector<2x96xf32>
    %24 = tpu.matmul %23, %2, %cst_10 {dimension_numbers = #tpu.dot_dimension_numbers<[1], [0], [0], [1], [0, 0, 1, 1], [], []>} : vector<2x32xf32>, vector<32x96xf32>, vector<2x96xf32> -> vector<2x96xf32>
    %25 = vector.extract_strided_slice %11 {offsets = [0, 0], sizes = [2, 32], strides = [1, 1]} : vector<16x32xf32> to vector<2x32xf32>
    %26 = vector.extract_strided_slice %24 {offsets = [0, 0], sizes = [2, 32], strides = [1, 1]} : vector<2x96xf32> to vector<2x32xf32>
    %27 = arith.addf %25, %26 : vector<2x32xf32>
    %28 = arith.negf %27 : vector<2x32xf32>
    %29 = math.exp %28 : vector<2x32xf32>
    %cst_11 = arith.constant 1.000000e+00 : f32
    %30 = vector.broadcast %cst_11 : f32 to vector<2x32xf32>
    %31 = arith.addf %30, %29 : vector<2x32xf32>
    %32 = arith.divf %30, %31 : vector<2x32xf32>
    %33 = vector.extract_strided_slice %17 {offsets = [0, 0], sizes = [2, 32], strides = [1, 1]} : vector<16x32xf32> to vector<2x32xf32>
    %34 = vector.extract_strided_slice %24 {offsets = [0, 32], sizes = [2, 32], strides = [1, 1]} : vector<2x96xf32> to vector<2x32xf32>
    %35 = arith.addf %33, %34 : vector<2x32xf32>
    %36 = arith.negf %35 : vector<2x32xf32>
    %37 = math.exp %36 : vector<2x32xf32>
    %cst_12 = arith.constant 1.000000e+00 : f32
    %38 = vector.broadcast %cst_12 : f32 to vector<2x32xf32>
    %39 = arith.addf %38, %37 : vector<2x32xf32>
    %40 = arith.divf %38, %39 : vector<2x32xf32>
    %41 = vector.extract_strided_slice %21 {offsets = [0, 0], sizes = [2, 32], strides = [1, 1]} : vector<16x32xf32> to vector<2x32xf32>
    %42 = vector.extract_strided_slice %24 {offsets = [0, 64], sizes = [2, 32], strides = [1, 1]} : vector<2x96xf32> to vector<2x32xf32>
    %43 = vector.broadcast %22 : vector<1x32xf32> to vector<2x32xf32>
    %44 = arith.addf %42, %43 : vector<2x32xf32>
    %45 = arith.mulf %32, %44 : vector<2x32xf32>
    %46 = arith.addf %41, %45 : vector<2x32xf32>
    %47 = math.tanh %46 : vector<2x32xf32>
    %cst_13 = arith.constant 1.000000e+00 : f32
    %48 = vector.broadcast %cst_13 : f32 to vector<2x32xf32>
    %49 = arith.subf %48, %40 : vector<2x32xf32>
    %50 = arith.mulf %49, %47 : vector<2x32xf32>
    %51 = arith.mulf %40, %23 : vector<2x32xf32>
    %52 = arith.addf %50, %51 : vector<2x32xf32>
    %c0_14 = arith.constant 0 : index
    %c0_15 = arith.constant 0 : index
    %c0_16 = arith.constant 0 : index
    %53 = vector.load %arg6[%c0_14, %c0_15, %c0_16] : memref<8x2x32xf32, #tpu.memory_space<vmem>>, vector<1x2x32xf32>
    %54 = vector.shape_cast %53 : vector<1x2x32xf32> to vector<2x32xf32>
    %55 = vector.shape_cast %52 : vector<2x32xf32> to vector<1x2x32xf32>
    tpu.vector_store %arg6[%c0_14, %c0_15, %c0_16], %55 {strides = array<i32>} : memref<8x2x32xf32, #tpu.memory_space<vmem>>, vector<1x2x32xf32>,
    %cst_17 = arith.constant dense<0.000000e+00> : vector<2x96xf32>
    %56 = tpu.matmul %52, %2, %cst_17 {dimension_numbers = #tpu.dot_dimension_numbers<[1], [0], [0], [1], [0, 0, 1, 1], [], []>} : vector<2x32xf32>, vector<32x96xf32>, vector<2x96xf32> -> vector<2x96xf32>
    %57 = vector.extract_strided_slice %11 {offsets = [2, 0], sizes = [2, 32], strides = [1, 1]} : vector<16x32xf32> to vector<2x32xf32>
    %58 = vector.extract_strided_slice %56 {offsets = [0, 0], sizes = [2, 32], strides = [1, 1]} : vector<2x96xf32> to vector<2x32xf32>
    %59 = arith.addf %57, %58 : vector<2x32xf32>
    %60 = arith.negf %59 : vector<2x32xf32>
    %61 = math.exp %60 : vector<2x32xf32>
    %cst_18 = arith.constant 1.000000e+00 : f32
    %62 = vector.broadcast %cst_18 : f32 to vector<2x32xf32>
    %63 = arith.addf %62, %61 : vector<2x32xf32>
    %64 = arith.divf %62, %63 : vector<2x32xf32>
    %65 = vector.extract_strided_slice %17 {offsets = [2, 0], sizes = [2, 32], strides = [1, 1]} : vector<16x32xf32> to vector<2x32xf32>
    %66 = vector.extract_strided_slice %56 {offsets = [0, 32], sizes = [2, 32], strides = [1, 1]} : vector<2x96xf32> to vector<2x32xf32>
    %67 = arith.addf %65, %66 : vector<2x32xf32>
    %68 = arith.negf %67 : vector<2x32xf32>
    %69 = math.exp %68 : vector<2x32xf32>
    %cst_19 = arith.constant 1.000000e+00 : f32
    %70 = vector.broadcast %cst_19 : f32 to vector<2x32xf32>
    %71 = arith.addf %70, %69 : vector<2x32xf32>
    %72 = arith.divf %70, %71 : vector<2x32xf32>
    %73 = vector.extract_strided_slice %21 {offsets = [2, 0], sizes = [2, 32], strides = [1, 1]} : vector<16x32xf32> to vector<2x32xf32>
    %74 = vector.extract_strided_slice %56 {offsets = [0, 64], sizes = [2, 32], strides = [1, 1]} : vector<2x96xf32> to vector<2x32xf32>
    %75 = vector.broadcast %22 : vector<1x32xf32> to vector<2x32xf32>
    %76 = arith.addf %74, %75 : vector<2x32xf32>
    %77 = arith.mulf %64, %76 : vector<2x32xf32>
    %78 = arith.addf %73, %77 : vector<2x32xf32>
    %79 = math.tanh %78 : vector<2x32xf32>
    %cst_20 = arith.constant 1.000000e+00 : f32
    %80 = vector.broadcast %cst_20 : f32 to vector<2x32xf32>
    %81 = arith.subf %80, %72 : vector<2x32xf32>
    %82 = arith.mulf %81, %79 : vector<2x32xf32>
    %83 = arith.mulf %72, %52 : vector<2x32xf32>
    %84 = arith.addf %82, %83 : vector<2x32xf32>
    %c1 = arith.constant 1 : index
    %c0_21 = arith.constant 0 : index
    %c0_22 = arith.constant 0 : index
    %85 = vector.load %arg6[%c1, %c0_21, %c0_22] : memref<8x2x32xf32, #tpu.memory_space<vmem>>, vector<1x2x32xf32>
    %86 = vector.shape_cast %85 : vector<1x2x32xf32> to vector<2x32xf32>
    %87 = vector.shape_cast %84 : vector<2x32xf32> to vector<1x2x32xf32>
    tpu.vector_store %arg6[%c1, %c0_21, %c0_22], %87 {strides = array<i32>} : memref<8x2x32xf32, #tpu.memory_space<vmem>>, vector<1x2x32xf32>,
    %cst_23 = arith.constant dense<0.000000e+00> : vector<2x96xf32>
    %88 = tpu.matmul %84, %2, %cst_23 {dimension_numbers = #tpu.dot_dimension_numbers<[1], [0], [0], [1], [0, 0, 1, 1], [], []>} : vector<2x32xf32>, vector<32x96xf32>, vector<2x96xf32> -> vector<2x96xf32>
    %89 = vector.extract_strided_slice %11 {offsets = [4, 0], sizes = [2, 32], strides = [1, 1]} : vector<16x32xf32> to vector<2x32xf32>
    %90 = vector.extract_strided_slice %88 {offsets = [0, 0], sizes = [2, 32], strides = [1, 1]} : vector<2x96xf32> to vector<2x32xf32>
    %91 = arith.addf %89, %90 : vector<2x32xf32>
    %92 = arith.negf %91 : vector<2x32xf32>
    %93 = math.exp %92 : vector<2x32xf32>
    %cst_24 = arith.constant 1.000000e+00 : f32
    %94 = vector.broadcast %cst_24 : f32 to vector<2x32xf32>
    %95 = arith.addf %94, %93 : vector<2x32xf32>
    %96 = arith.divf %94, %95 : vector<2x32xf32>
    %97 = vector.extract_strided_slice %17 {offsets = [4, 0], sizes = [2, 32], strides = [1, 1]} : vector<16x32xf32> to vector<2x32xf32>
    %98 = vector.extract_strided_slice %88 {offsets = [0, 32], sizes = [2, 32], strides = [1, 1]} : vector<2x96xf32> to vector<2x32xf32>
    %99 = arith.addf %97, %98 : vector<2x32xf32>
    %100 = arith.negf %99 : vector<2x32xf32>
    %101 = math.exp %100 : vector<2x32xf32>
    %cst_25 = arith.constant 1.000000e+00 : f32
    %102 = vector.broadcast %cst_25 : f32 to vector<2x32xf32>
    %103 = arith.addf %102, %101 : vector<2x32xf32>
    %104 = arith.divf %102, %103 : vector<2x32xf32>
    %105 = vector.extract_strided_slice %21 {offsets = [4, 0], sizes = [2, 32], strides = [1, 1]} : vector<16x32xf32> to vector<2x32xf32>
    %106 = vector.extract_strided_slice %88 {offsets = [0, 64], sizes = [2, 32], strides = [1, 1]} : vector<2x96xf32> to vector<2x32xf32>
    %107 = vector.broadcast %22 : vector<1x32xf32> to vector<2x32xf32>
    %108 = arith.addf %106, %107 : vector<2x32xf32>
    %109 = arith.mulf %96, %108 : vector<2x32xf32>
    %110 = arith.addf %105, %109 : vector<2x32xf32>
    %111 = math.tanh %110 : vector<2x32xf32>
    %cst_26 = arith.constant 1.000000e+00 : f32
    %112 = vector.broadcast %cst_26 : f32 to vector<2x32xf32>
    %113 = arith.subf %112, %104 : vector<2x32xf32>
    %114 = arith.mulf %113, %111 : vector<2x32xf32>
    %115 = arith.mulf %104, %84 : vector<2x32xf32>
    %116 = arith.addf %114, %115 : vector<2x32xf32>
    %c2 = arith.constant 2 : index
    %c0_27 = arith.constant 0 : index
    %c0_28 = arith.constant 0 : index
    %117 = vector.load %arg6[%c2, %c0_27, %c0_28] : memref<8x2x32xf32, #tpu.memory_space<vmem>>, vector<1x2x32xf32>
    %118 = vector.shape_cast %117 : vector<1x2x32xf32> to vector<2x32xf32>
    %119 = vector.shape_cast %116 : vector<2x32xf32> to vector<1x2x32xf32>
    tpu.vector_store %arg6[%c2, %c0_27, %c0_28], %119 {strides = array<i32>} : memref<8x2x32xf32, #tpu.memory_space<vmem>>, vector<1x2x32xf32>,
    %cst_29 = arith.constant dense<0.000000e+00> : vector<2x96xf32>
    %120 = tpu.matmul %116, %2, %cst_29 {dimension_numbers = #tpu.dot_dimension_numbers<[1], [0], [0], [1], [0, 0, 1, 1], [], []>} : vector<2x32xf32>, vector<32x96xf32>, vector<2x96xf32> -> vector<2x96xf32>
    %121 = vector.extract_strided_slice %11 {offsets = [6, 0], sizes = [2, 32], strides = [1, 1]} : vector<16x32xf32> to vector<2x32xf32>
    %122 = vector.extract_strided_slice %120 {offsets = [0, 0], sizes = [2, 32], strides = [1, 1]} : vector<2x96xf32> to vector<2x32xf32>
    %123 = arith.addf %121, %122 : vector<2x32xf32>
    %124 = arith.negf %123 : vector<2x32xf32>
    %125 = math.exp %124 : vector<2x32xf32>
    %cst_30 = arith.constant 1.000000e+00 : f32
    %126 = vector.broadcast %cst_30 : f32 to vector<2x32xf32>
    %127 = arith.addf %126, %125 : vector<2x32xf32>
    %128 = arith.divf %126, %127 : vector<2x32xf32>
    %129 = vector.extract_strided_slice %17 {offsets = [6, 0], sizes = [2, 32], strides = [1, 1]} : vector<16x32xf32> to vector<2x32xf32>
    %130 = vector.extract_strided_slice %120 {offsets = [0, 32], sizes = [2, 32], strides = [1, 1]} : vector<2x96xf32> to vector<2x32xf32>
    %131 = arith.addf %129, %130 : vector<2x32xf32>
    %132 = arith.negf %131 : vector<2x32xf32>
    %133 = math.exp %132 : vector<2x32xf32>
    %cst_31 = arith.constant 1.000000e+00 : f32
    %134 = vector.broadcast %cst_31 : f32 to vector<2x32xf32>
    %135 = arith.addf %134, %133 : vector<2x32xf32>
    %136 = arith.divf %134, %135 : vector<2x32xf32>
    %137 = vector.extract_strided_slice %21 {offsets = [6, 0], sizes = [2, 32], strides = [1, 1]} : vector<16x32xf32> to vector<2x32xf32>
    %138 = vector.extract_strided_slice %120 {offsets = [0, 64], sizes = [2, 32], strides = [1, 1]} : vector<2x96xf32> to vector<2x32xf32>
    %139 = vector.broadcast %22 : vector<1x32xf32> to vector<2x32xf32>
    %140 = arith.addf %138, %139 : vector<2x32xf32>
    %141 = arith.mulf %128, %140 : vector<2x32xf32>
    %142 = arith.addf %137, %141 : vector<2x32xf32>
    %143 = math.tanh %142 : vector<2x32xf32>
    %cst_32 = arith.constant 1.000000e+00 : f32
    %144 = vector.broadcast %cst_32 : f32 to vector<2x32xf32>
    %145 = arith.subf %144, %136 : vector<2x32xf32>
    %146 = arith.mulf %145, %143 : vector<2x32xf32>
    %147 = arith.mulf %136, %116 : vector<2x32xf32>
    %148 = arith.addf %146, %147 : vector<2x32xf32>
    %c3 = arith.constant 3 : index
    %c0_33 = arith.constant 0 : index
    %c0_34 = arith.constant 0 : index
    %149 = vector.load %arg6[%c3, %c0_33, %c0_34] : memref<8x2x32xf32, #tpu.memory_space<vmem>>, vector<1x2x32xf32>
    %150 = vector.shape_cast %149 : vector<1x2x32xf32> to vector<2x32xf32>
    %151 = vector.shape_cast %148 : vector<2x32xf32> to vector<1x2x32xf32>
    tpu.vector_store %arg6[%c3, %c0_33, %c0_34], %151 {strides = array<i32>} : memref<8x2x32xf32, #tpu.memory_space<vmem>>, vector<1x2x32xf32>,
    %cst_35 = arith.constant dense<0.000000e+00> : vector<2x96xf32>
    %152 = tpu.matmul %148, %2, %cst_35 {dimension_numbers = #tpu.dot_dimension_numbers<[1], [0], [0], [1], [0, 0, 1, 1], [], []>} : vector<2x32xf32>, vector<32x96xf32>, vector<2x96xf32> -> vector<2x96xf32>
    %153 = vector.extract_strided_slice %11 {offsets = [8, 0], sizes = [2, 32], strides = [1, 1]} : vector<16x32xf32> to vector<2x32xf32>
    %154 = vector.extract_strided_slice %152 {offsets = [0, 0], sizes = [2, 32], strides = [1, 1]} : vector<2x96xf32> to vector<2x32xf32>
    %155 = arith.addf %153, %154 : vector<2x32xf32>
    %156 = arith.negf %155 : vector<2x32xf32>
    %157 = math.exp %156 : vector<2x32xf32>
    %cst_36 = arith.constant 1.000000e+00 : f32
    %158 = vector.broadcast %cst_36 : f32 to vector<2x32xf32>
    %159 = arith.addf %158, %157 : vector<2x32xf32>
    %160 = arith.divf %158, %159 : vector<2x32xf32>
    %161 = vector.extract_strided_slice %17 {offsets = [8, 0], sizes = [2, 32], strides = [1, 1]} : vector<16x32xf32> to vector<2x32xf32>
    %162 = vector.extract_strided_slice %152 {offsets = [0, 32], sizes = [2, 32], strides = [1, 1]} : vector<2x96xf32> to vector<2x32xf32>
    %163 = arith.addf %161, %162 : vector<2x32xf32>
    %164 = arith.negf %163 : vector<2x32xf32>
    %165 = math.exp %164 : vector<2x32xf32>
    %cst_37 = arith.constant 1.000000e+00 : f32
    %166 = vector.broadcast %cst_37 : f32 to vector<2x32xf32>
    %167 = arith.addf %166, %165 : vector<2x32xf32>
    %168 = arith.divf %166, %167 : vector<2x32xf32>
    %169 = vector.extract_strided_slice %21 {offsets = [8, 0], sizes = [2, 32], strides = [1, 1]} : vector<16x32xf32> to vector<2x32xf32>
    %170 = vector.extract_strided_slice %152 {offsets = [0, 64], sizes = [2, 32], strides = [1, 1]} : vector<2x96xf32> to vector<2x32xf32>
    %171 = vector.broadcast %22 : vector<1x32xf32> to vector<2x32xf32>
    %172 = arith.addf %170, %171 : vector<2x32xf32>
    %173 = arith.mulf %160, %172 : vector<2x32xf32>
    %174 = arith.addf %169, %173 : vector<2x32xf32>
    %175 = math.tanh %174 : vector<2x32xf32>
    %cst_38 = arith.constant 1.000000e+00 : f32
    %176 = vector.broadcast %cst_38 : f32 to vector<2x32xf32>
    %177 = arith.subf %176, %168 : vector<2x32xf32>
    %178 = arith.mulf %177, %175 : vector<2x32xf32>
    %179 = arith.mulf %168, %148 : vector<2x32xf32>
    %180 = arith.addf %178, %179 : vector<2x32xf32>
    %c4 = arith.constant 4 : index
    %c0_39 = arith.constant 0 : index
    %c0_40 = arith.constant 0 : index
    %181 = vector.load %arg6[%c4, %c0_39, %c0_40] : memref<8x2x32xf32, #tpu.memory_space<vmem>>, vector<1x2x32xf32>
    %182 = vector.shape_cast %181 : vector<1x2x32xf32> to vector<2x32xf32>
    %183 = vector.shape_cast %180 : vector<2x32xf32> to vector<1x2x32xf32>
    tpu.vector_store %arg6[%c4, %c0_39, %c0_40], %183 {strides = array<i32>} : memref<8x2x32xf32, #tpu.memory_space<vmem>>, vector<1x2x32xf32>,
    %cst_41 = arith.constant dense<0.000000e+00> : vector<2x96xf32>
    %184 = tpu.matmul %180, %2, %cst_41 {dimension_numbers = #tpu.dot_dimension_numbers<[1], [0], [0], [1], [0, 0, 1, 1], [], []>} : vector<2x32xf32>, vector<32x96xf32>, vector<2x96xf32> -> vector<2x96xf32>
    %185 = vector.extract_strided_slice %11 {offsets = [10, 0], sizes = [2, 32], strides = [1, 1]} : vector<16x32xf32> to vector<2x32xf32>
    %186 = vector.extract_strided_slice %184 {offsets = [0, 0], sizes = [2, 32], strides = [1, 1]} : vector<2x96xf32> to vector<2x32xf32>
    %187 = arith.addf %185, %186 : vector<2x32xf32>
    %188 = arith.negf %187 : vector<2x32xf32>
    %189 = math.exp %188 : vector<2x32xf32>
    %cst_42 = arith.constant 1.000000e+00 : f32
    %190 = vector.broadcast %cst_42 : f32 to vector<2x32xf32>
    %191 = arith.addf %190, %189 : vector<2x32xf32>
    %192 = arith.divf %190, %191 : vector<2x32xf32>
    %193 = vector.extract_strided_slice %17 {offsets = [10, 0], sizes = [2, 32], strides = [1, 1]} : vector<16x32xf32> to vector<2x32xf32>
    %194 = vector.extract_strided_slice %184 {offsets = [0, 32], sizes = [2, 32], strides = [1, 1]} : vector<2x96xf32> to vector<2x32xf32>
    %195 = arith.addf %193, %194 : vector<2x32xf32>
    %196 = arith.negf %195 : vector<2x32xf32>
    %197 = math.exp %196 : vector<2x32xf32>
    %cst_43 = arith.constant 1.000000e+00 : f32
    %198 = vector.broadcast %cst_43 : f32 to vector<2x32xf32>
    %199 = arith.addf %198, %197 : vector<2x32xf32>
    %200 = arith.divf %198, %199 : vector<2x32xf32>
    %201 = vector.extract_strided_slice %21 {offsets = [10, 0], sizes = [2, 32], strides = [1, 1]} : vector<16x32xf32> to vector<2x32xf32>
    %202 = vector.extract_strided_slice %184 {offsets = [0, 64], sizes = [2, 32], strides = [1, 1]} : vector<2x96xf32> to vector<2x32xf32>
    %203 = vector.broadcast %22 : vector<1x32xf32> to vector<2x32xf32>
    %204 = arith.addf %202, %203 : vector<2x32xf32>
    %205 = arith.mulf %192, %204 : vector<2x32xf32>
    %206 = arith.addf %201, %205 : vector<2x32xf32>
    %207 = math.tanh %206 : vector<2x32xf32>
    %cst_44 = arith.constant 1.000000e+00 : f32
    %208 = vector.broadcast %cst_44 : f32 to vector<2x32xf32>
    %209 = arith.subf %208, %200 : vector<2x32xf32>
    %210 = arith.mulf %209, %207 : vector<2x32xf32>
    %211 = arith.mulf %200, %180 : vector<2x32xf32>
    %212 = arith.addf %210, %211 : vector<2x32xf32>
    %c5 = arith.constant 5 : index
    %c0_45 = arith.constant 0 : index
    %c0_46 = arith.constant 0 : index
    %213 = vector.load %arg6[%c5, %c0_45, %c0_46] : memref<8x2x32xf32, #tpu.memory_space<vmem>>, vector<1x2x32xf32>
    %214 = vector.shape_cast %213 : vector<1x2x32xf32> to vector<2x32xf32>
    %215 = vector.shape_cast %212 : vector<2x32xf32> to vector<1x2x32xf32>
    tpu.vector_store %arg6[%c5, %c0_45, %c0_46], %215 {strides = array<i32>} : memref<8x2x32xf32, #tpu.memory_space<vmem>>, vector<1x2x32xf32>,
    %cst_47 = arith.constant dense<0.000000e+00> : vector<2x96xf32>
    %216 = tpu.matmul %212, %2, %cst_47 {dimension_numbers = #tpu.dot_dimension_numbers<[1], [0], [0], [1], [0, 0, 1, 1], [], []>} : vector<2x32xf32>, vector<32x96xf32>, vector<2x96xf32> -> vector<2x96xf32>
    %217 = vector.extract_strided_slice %11 {offsets = [12, 0], sizes = [2, 32], strides = [1, 1]} : vector<16x32xf32> to vector<2x32xf32>
    %218 = vector.extract_strided_slice %216 {offsets = [0, 0], sizes = [2, 32], strides = [1, 1]} : vector<2x96xf32> to vector<2x32xf32>
    %219 = arith.addf %217, %218 : vector<2x32xf32>
    %220 = arith.negf %219 : vector<2x32xf32>
    %221 = math.exp %220 : vector<2x32xf32>
    %cst_48 = arith.constant 1.000000e+00 : f32
    %222 = vector.broadcast %cst_48 : f32 to vector<2x32xf32>
    %223 = arith.addf %222, %221 : vector<2x32xf32>
    %224 = arith.divf %222, %223 : vector<2x32xf32>
    %225 = vector.extract_strided_slice %17 {offsets = [12, 0], sizes = [2, 32], strides = [1, 1]} : vector<16x32xf32> to vector<2x32xf32>
    %226 = vector.extract_strided_slice %216 {offsets = [0, 32], sizes = [2, 32], strides = [1, 1]} : vector<2x96xf32> to vector<2x32xf32>
    %227 = arith.addf %225, %226 : vector<2x32xf32>
    %228 = arith.negf %227 : vector<2x32xf32>
    %229 = math.exp %228 : vector<2x32xf32>
    %cst_49 = arith.constant 1.000000e+00 : f32
    %230 = vector.broadcast %cst_49 : f32 to vector<2x32xf32>
    %231 = arith.addf %230, %229 : vector<2x32xf32>
    %232 = arith.divf %230, %231 : vector<2x32xf32>
    %233 = vector.extract_strided_slice %21 {offsets = [12, 0], sizes = [2, 32], strides = [1, 1]} : vector<16x32xf32> to vector<2x32xf32>
    %234 = vector.extract_strided_slice %216 {offsets = [0, 64], sizes = [2, 32], strides = [1, 1]} : vector<2x96xf32> to vector<2x32xf32>
    %235 = vector.broadcast %22 : vector<1x32xf32> to vector<2x32xf32>
    %236 = arith.addf %234, %235 : vector<2x32xf32>
    %237 = arith.mulf %224, %236 : vector<2x32xf32>
    %238 = arith.addf %233, %237 : vector<2x32xf32>
    %239 = math.tanh %238 : vector<2x32xf32>
    %cst_50 = arith.constant 1.000000e+00 : f32
    %240 = vector.broadcast %cst_50 : f32 to vector<2x32xf32>
    %241 = arith.subf %240, %232 : vector<2x32xf32>
    %242 = arith.mulf %241, %239 : vector<2x32xf32>
    %243 = arith.mulf %232, %212 : vector<2x32xf32>
    %244 = arith.addf %242, %243 : vector<2x32xf32>
    %c6 = arith.constant 6 : index
    %c0_51 = arith.constant 0 : index
    %c0_52 = arith.constant 0 : index
    %245 = vector.load %arg6[%c6, %c0_51, %c0_52] : memref<8x2x32xf32, #tpu.memory_space<vmem>>, vector<1x2x32xf32>
    %246 = vector.shape_cast %245 : vector<1x2x32xf32> to vector<2x32xf32>
    %247 = vector.shape_cast %244 : vector<2x32xf32> to vector<1x2x32xf32>
    tpu.vector_store %arg6[%c6, %c0_51, %c0_52], %247 {strides = array<i32>} : memref<8x2x32xf32, #tpu.memory_space<vmem>>, vector<1x2x32xf32>,
    %cst_53 = arith.constant dense<0.000000e+00> : vector<2x96xf32>
    %248 = tpu.matmul %244, %2, %cst_53 {dimension_numbers = #tpu.dot_dimension_numbers<[1], [0], [0], [1], [0, 0, 1, 1], [], []>} : vector<2x32xf32>, vector<32x96xf32>, vector<2x96xf32> -> vector<2x96xf32>
    %249 = vector.extract_strided_slice %11 {offsets = [14, 0], sizes = [2, 32], strides = [1, 1]} : vector<16x32xf32> to vector<2x32xf32>
    %250 = vector.extract_strided_slice %248 {offsets = [0, 0], sizes = [2, 32], strides = [1, 1]} : vector<2x96xf32> to vector<2x32xf32>
    %251 = arith.addf %249, %250 : vector<2x32xf32>
    %252 = arith.negf %251 : vector<2x32xf32>
    %253 = math.exp %252 : vector<2x32xf32>
    %cst_54 = arith.constant 1.000000e+00 : f32
    %254 = vector.broadcast %cst_54 : f32 to vector<2x32xf32>
    %255 = arith.addf %254, %253 : vector<2x32xf32>
    %256 = arith.divf %254, %255 : vector<2x32xf32>
    %257 = vector.extract_strided_slice %17 {offsets = [14, 0], sizes = [2, 32], strides = [1, 1]} : vector<16x32xf32> to vector<2x32xf32>
    %258 = vector.extract_strided_slice %248 {offsets = [0, 32], sizes = [2, 32], strides = [1, 1]} : vector<2x96xf32> to vector<2x32xf32>
    %259 = arith.addf %257, %258 : vector<2x32xf32>
    %260 = arith.negf %259 : vector<2x32xf32>
    %261 = math.exp %260 : vector<2x32xf32>
    %cst_55 = arith.constant 1.000000e+00 : f32
    %262 = vector.broadcast %cst_55 : f32 to vector<2x32xf32>
    %263 = arith.addf %262, %261 : vector<2x32xf32>
    %264 = arith.divf %262, %263 : vector<2x32xf32>
    %265 = vector.extract_strided_slice %21 {offsets = [14, 0], sizes = [2, 32], strides = [1, 1]} : vector<16x32xf32> to vector<2x32xf32>
    %266 = vector.extract_strided_slice %248 {offsets = [0, 64], sizes = [2, 32], strides = [1, 1]} : vector<2x96xf32> to vector<2x32xf32>
    %267 = vector.broadcast %22 : vector<1x32xf32> to vector<2x32xf32>
    %268 = arith.addf %266, %267 : vector<2x32xf32>
    %269 = arith.mulf %256, %268 : vector<2x32xf32>
    %270 = arith.addf %265, %269 : vector<2x32xf32>
    %271 = math.tanh %270 : vector<2x32xf32>
    %cst_56 = arith.constant 1.000000e+00 : f32
    %272 = vector.broadcast %cst_56 : f32 to vector<2x32xf32>
    %273 = arith.subf %272, %264 : vector<2x32xf32>
    %274 = arith.mulf %273, %271 : vector<2x32xf32>
    %275 = arith.mulf %264, %244 : vector<2x32xf32>
    %276 = arith.addf %274, %275 : vector<2x32xf32>
    %c7 = arith.constant 7 : index
    %c0_57 = arith.constant 0 : index
    %c0_58 = arith.constant 0 : index
    %277 = vector.load %arg6[%c7, %c0_57, %c0_58] : memref<8x2x32xf32, #tpu.memory_space<vmem>>, vector<1x2x32xf32>
    %278 = vector.shape_cast %277 : vector<1x2x32xf32> to vector<2x32xf32>
    %279 = vector.shape_cast %276 : vector<2x32xf32> to vector<1x2x32xf32>
    tpu.vector_store %arg6[%c7, %c0_57, %c0_58], %279 {strides = array<i32>} : memref<8x2x32xf32, #tpu.memory_space<vmem>>, vector<1x2x32xf32>,
    return
  }
  func.func @transform_0(%arg0: i32) -> (i32, i32) {
    %c0_i32 = arith.constant 0 : i32
    %c0_i32_0 = arith.constant 0 : i32
    %c0_i32_1 = arith.constant 0 : i32
    return %c0_i32, %c0_i32_0 : i32, i32
  }
  func.func @transform_1(%arg0: i32) -> (i32, i32) {
    %c0_i32 = arith.constant 0 : i32
    %c0_i32_0 = arith.constant 0 : i32
    %c0_i32_1 = arith.constant 0 : i32
    return %c0_i32, %c0_i32_0 : i32, i32
  }
  func.func @transform_2(%arg0: i32) -> (i32, i32) {
    %c0_i32 = arith.constant 0 : i32
    %c0_i32_0 = arith.constant 0 : i32
    %c0_i32_1 = arith.constant 0 : i32
    return %c0_i32, %c0_i32_0 : i32, i32
  }
  func.func @transform_3(%arg0: i32) -> (i32, i32) {
    %c0_i32 = arith.constant 0 : i32
    %c0_i32_0 = arith.constant 0 : i32
    %c0_i32_1 = arith.constant 0 : i32
    return %c0_i32, %c0_i32_0 : i32, i32
  }
  func.func @transform_4(%arg0: i32) -> (i32, i32) {
    %c0_i32 = arith.constant 0 : i32
    %c0_i32_0 = arith.constant 0 : i32
    %c0_i32_1 = arith.constant 0 : i32
    return %c0_i32, %c0_i32_0 : i32, i32
  }
  func.func @transform_5(%arg0: i32) -> (i32, i32, i32) {
    %c0_i32 = arith.constant 0 : i32
    %c0_i32_0 = arith.constant 0 : i32
    %c0_i32_1 = arith.constant 0 : i32
    %c0_i32_2 = arith.constant 0 : i32
    return %c0_i32, %c0_i32_0, %c0_i32_1 : i32, i32, i32
  }
}

</mosaic_0001>

<bundles_post_ra>
// kernel: encoder_forward.1
= control target key start
LH: loop header
LB: loop body
LE: loop exit
PB: predicated region body
PF: predicated region fallthrough
CT: control target
= control target key end

     0   :  { %v1315_v0 = vmov 0.0|0.0   ;;  %vm1316_vm0 = vmmov 0   ;;  %v1317_v4 = vmov 0.0   ;;  %vm32_vm1 = vcmask 261120   ;;  %s1568_s1 = inlined_call_operand.vmem [shape: f32[32,96], index: 1, kind: input, shape index: {}]   ;;  %s1569_s2 = inlined_call_operand.vmem [shape: f32[32,96], index: 2, kind: input, shape index: {}]   ;;  %s1570_s0 = inlined_call_operand.vmem [shape: f32[16,32], index: 0, kind: input, shape index: {}]   ;;  %s1571_s3 = inlined_call_operand.vmem [shape: f32[1,96], index: 3, kind: input, shape index: {}]   ;;  %s1572_s4 = inlined_call_operand.vmem [shape: f32[1,96], index: 4, kind: input, shape index: {}]   ;;  %s1573_s5 = inlined_call_operand.vmem [shape: f32[8,2,32], index: 5, kind: output, shape index: {}]  }
   0x1   :  { %1214 = vmatprep.subr.bf16.mxu1 %v1315_v0  ;;  %v28_v1 = vld [vmem:[%s1568_s1] sm:$0xff]  ;;  %v29_v2 = vld [vmem:[%s1568_s1 + $0x8] sm:$0xff]  ;;  %1126 = vmatprep.mubr.msk.f32.mxu1 %vm1316_vm0, %v1317_v4  ;;  %v30_v7 = vld [vmem:[%s1568_s1 + $0x10] sm:$0xff]  ;;  %v116_v16 = vlaneseq  ;;  %vm241_vm2 = vcmask 254976   ;;  %vm353_vm3 = vcmask 257026   ;;  %vm583_vm4 = vcmask 261126  }
   0x2   :  { %v22_v3 = vld [vmem:[%s1569_s2] sm:$0xff]  ;;  %v1206_v5 = vpack.c.bf16 %v29_v2, %v28_v1  ;;  %v23_v6 = vld [vmem:[%s1569_s2 + $0x8] sm:$0xff]  ;;  %v31_v8 = vld [vmem:[%s1568_s1 + $0x18] sm:$0xff]  ;;  %vm468_vm5 = vcmask 259076  }
   0x3   :  { %v1371_v9 = vpack.c.bf16 %v23_v6, %v22_v3  ;;  %v1210_v10 = vpack.c.bf16 %v31_v8, %v30_v7  ;;  %v24_v11 = vld [vmem:[%s1569_s2 + $0x10] sm:$0xff]  ;;  %v25_v12 = vld [vmem:[%s1569_s2 + $0x18] sm:$0xff]  ;;  %v26_v13 = vld [vmem:[%s1570_s0] sm:$0xff]  ;;  %v117_v17 = vshrl.u32 %v116_v16, 7 }
   0x4   :  { %1207 = vmatprep.subr.bf16.mxu0 %v1206_v5  ;;  %1115 = vmatprep.mubr.msk.f32.mxu0 %vm32_vm1, %v26_v13  ;;  %v1384_v14 = vpack.c.bf16 %v25_v12, %v24_v11  ;;  %v27_v15 = vld [vmem:[%s1570_s0 + $0x8] sm:$0xff]  ;;  %v20_v18 = vld [vmem:[%s1571_s3] sm:$0x1]  ;;  %s1318_s3 = smov 64  }
   0x5   :  { %1216 = vmatpush3.bf16.msra.mxu1 %v1371_v9  ;;  %1209 = vmatpush3.bf16.msra.mxu0 %v1206_v5  ;;  %v21_v19 = vld [vmem:[%s1572_s4] sm:$0x1]  ;;  %v118_v21 = vsub.s32 0, %v117_v17  ;;  %s1319_s4 = smov 96  }
   0x6   :  { %1217 = vmatprep.subr.bf16.mxu1 %v1315_v0  ;;  %1211 = vmatprep.subr.bf16.mxu0 %v1210_v10  ;;  %v114_v20 = vadd.f32 %v21_v19, %v20_v18 }
   0x7   :  { %v127_v23 = vrot.slane %v20_v18, %v118_v21  ;;  %v1413_v24 = vrot.slane %v21_v19, %v118_v21 }
   0x8   :  { %v119_v22 = vrot.slane %v114_v20, %v118_v21 }
   0x9   :  { %1219 = vmatpush3.bf16.msra.mxu1 %v1384_v14  ;;  %1213 = vmatpush3.bf16.msra.mxu0 %v1210_v10 }
   0xa   :  { %1220 = vmatprep.subr.bf16.mxu0 %v1315_v0  ;;  %1226 = vmatprep.subr.bf16.mxu1 %v1315_v0 }
   0xc   :  { %1127 = vmatmul.mubr.f32.vlgmr.msra.gmra.mrb[0].mxu1 %v1317_v4  ;;  %1116 = vmatmul.mubr.msk.f32.vlgmr.msra.gmra.mrb[0].mxu0 %vm32_vm1, %v27_v15 }
   0xd   :  { %1222 = vmatpush3.bf16.msra.mxu0 %v1371_v9  ;;  %1137 = vmatprep.mubr.msk.f32.mxu0 %vm1316_vm0, %v1317_v4 }
   0xe   :  { %1223 = vmatprep.subr.bf16.mxu0 %v1315_v0  ;;  %1228 = vmatpush3.bf16.msra.mxu1 %v1371_v9 }
   0xf   :  { %1229 = vmatprep.subr.bf16.mxu1 %v1315_v0  ;;  %1148 = vmatprep.mubr.msk.f32.mxu1 %vm1316_vm0, %v1317_v4 }
  0x11   :  { %1225 = vmatpush3.bf16.msra.mxu0 %v1384_v14 }
  0x12   :  { %1231 = vmatpush3.bf16.msra.mxu1 %v1384_v14  ;;  %1232 = vmatprep.subr.bf16.mxu0 %v1315_v0 }
  0x13   :  { %1238 = vmatprep.subr.bf16.mxu1 %v1315_v0 }
  0xdf   :  { %v200_v25 = vpop.f32.mrb[0].mxu1  ;;  %v1117_v26 = vpop.f32.mrb[0].mxu0 }
  0xe0   :  { %v1415_v27 = vadd.f32 %v1117_v26, %v119_v22  ;;  %v1417_v28 = vadd.f32 %v1117_v26, %v127_v23  ;;  %v1128_v29 = vpop.f32.mrb[1].mxu1  ;;  %v105_v30 = vpop.f32.mrb[1].mxu0  ;;  %v217_v31 = vadd.f32 %v1413_v24, %v200_v25 }
  0xe1   :  { %v1420_v32 = vadd.f32 %v119_v22, %v105_v30  ;;  %v1422_v33 = vadd.f32 %v127_v23, %v105_v30 }
  0xe2   :  { %219 = vrot.lane.b32.xlu0 %v217_v31, %s1318_s3 }
  0xe3   :  { %v204_v34 = vadd.f32 %v200_v25, %v1420_v32 }
  0xe5   :  { %v1039_v35 = vmul.f32 -1.442695, %v204_v34 }
  0xe7   :  { %1267 = vpow2.f32 %v1039_v35 }
  0xf1   :  { %v1268_v36 = vpop.eup %1267 }
  0xf2   :  { %v208_v37 = vadd.f32 1.0, %v1268_v36 }
  0xf4   :  { %1269 = vrcp.f32 %v208_v37 }
  0xfe   :  { %v1270_v38 = vpop.eup %1269 }
  0xff   :  { %v229_v44 = vsub.f32 1.0, %v1270_v38  ;;  %v235_v46 = vmul.f32 0.0, %v1270_v38 }
 0x154   :  { %v220_v39 = vpop.permute.xlu0 %219 }
 0x155   :  { %v222_v40 = vmul.f32 %v1270_v38, %v220_v39 }
 0x157   :  { %224 = vrot.lane.b32.xlu0 %v222_v40, %s1318_s3 }
 0x1c9   :  { %v225_v41 = vpop.permute.xlu0 %224 }
 0x1ca   :  { %v227_v42 = vadd.f32 %v225_v41, %v1422_v33 }
 0x1cc   :  { %1271 = vtanh.f32 %v227_v42 }
 0x1d6   :  { %v1272_v43 = vpop.eup %1271 }
 0x1d7   :  { %231 = vrot.lane.b32.xlu1 %v1272_v43, %s1319_s4 }
 0x249   :  { %v232_v45 = vpop.permute.xlu1 %231 }
 0x24a   :  { %v234_v47 = vmul.f32 %v232_v45, %v229_v44 }
 0x24c   :  { %v236_v48 = vadd.f32 %v235_v46, %v234_v47 }
 0x24e   :  { %238 = vrot.lane.b32.xlu1 %v236_v48, %s1319_s4  ;;  %v344_v2 = vrot.slane %v236_v48, 6 }
 0x2c0   :  { %v239_v49 = vpop.permute.xlu1 %238 }
 0x2c1   :  { %242 = vst.msk [vmem:[%s1573_s5] sm:$0x3] %vm241_vm2, %v239_v49  ;;  %1138 = vmatmul.mubr.msk.f32.vlgmr.msra.gmra.mrb[2].mxu0 %vm32_vm1, %v239_v49 }
 0x2c2   :  { %1234 = vmatpush3.bf16.msra.mxu0 %v1371_v9  ;;  %1159 = vmatprep.mubr.msk.f32.mxu0 %vm1316_vm0, %v1317_v4 }
 0x2c3   :  { %1235 = vmatprep.subr.bf16.mxu0 %v1315_v0 }
 0x2c6   :  { %1237 = vmatpush3.bf16.msra.mxu0 %v1384_v14 }
 0x2c7   :  { %1244 = vmatprep.subr.bf16.mxu0 %v1315_v0 }
 0x394   :  { %v311_v50 = vpop.f32.mrb[2].mxu0 }
 0x395   :  { %v325_v51 = vadd.f32 %v311_v50, %v1413_v24  ;;  %v1139_v52 = vpop.f32.mrb[3].mxu0  ;;  %v316_v54 = vrot.slane %v311_v50, 6 }
 0x397   :  { %v327_v53 = vrot.slane %v325_v51, 6  ;;  %v318_v55 = vadd.f32 %v316_v54, %v1420_v32 }
 0x399   :  { %328 = vrot.lane.b32.xlu0 %v327_v53, %s1318_s3  ;;  %v1041_v56 = vmul.f32 -1.442695, %v318_v55 }
 0x39b   :  { %1273 = vpow2.f32 %v1041_v56 }
 0x3a5   :  { %v1274_v57 = vpop.eup %1273 }
 0x3a6   :  { %v322_v58 = vadd.f32 1.0, %v1274_v57 }
 0x3a8   :  { %1275 = vrcp.f32 %v322_v58 }
 0x3b2   :  { %v1276_v59 = vpop.eup %1275 }
 0x3b3   :  { %v338_v3 = vsub.f32 1.0, %v1276_v59  ;;  %v346_v7 = vmul.f32 %v1276_v59, %v344_v2 }
 0x40b   :  { %v329_v60 = vpop.permute.xlu0 %328 }
 0x40c   :  { %v331_v61 = vmul.f32 %v1276_v59, %v329_v60 }
 0x40e   :  { %333 = vrot.lane.b32.xlu1 %v331_v61, %s1318_s3 }
 0x480   :  { %v334_v62 = vpop.permute.xlu1 %333 }
 0x481   :  { %v336_v63 = vadd.f32 %v334_v62, %v1422_v33 }
 0x483   :  { %1277 = vtanh.f32 %v336_v63 }
 0x48d   :  { %v1278_v1 = vpop.eup %1277 }
 0x48e   :  { %340 = vrot.lane.b32.xlu0 %v1278_v1, %s1319_s4 }
 0x500   :  { %v341_v5 = vpop.permute.xlu0 %340 }
 0x501   :  { %v343_v6 = vmul.f32 %v341_v5, %v338_v3 }
 0x503   :  { %v1447_v8 = vadd.f32 %v346_v7, %v343_v6 }
 0x505   :  { %v355_v10 = vrot.slane %v1447_v8, 2  ;;  %v459_v34 = vrot.slane %v1447_v8, 6 }
 0x507   :  { %356 = vrot.lane.b32.xlu1 %v355_v10, %s1319_s4 }
 0x579   :  { %v357_v11 = vpop.permute.xlu1 %356 }
 0x57a   :  { %1149 = vmatmul.mubr.msk.f32.vlgmr.msra.gmra.mrb[2].mxu1 %vm32_vm1, %v357_v11 }
 0x57b   :  { %1240 = vmatpush3.bf16.msra.mxu1 %v1371_v9  ;;  %1170 = vmatprep.mubr.msk.f32.mxu1 %vm1316_vm0, %v1317_v4 }
 0x57c   :  { %1241 = vmatprep.subr.bf16.mxu1 %v1315_v0 }
 0x57f   :  { %1243 = vmatpush3.bf16.msra.mxu1 %v1384_v14 }
 0x580   :  { %1250 = vmatprep.subr.bf16.mxu1 %v1315_v0 }
 0x64d   :  { %v426_v12 = vpop.f32.mrb[2].mxu1 }
 0x64e   :  { %v440_v13 = vadd.f32 %v426_v12, %v1413_v24  ;;  %v1150_v15 = vpop.f32.mrb[3].mxu1  ;;  %v431_v17 = vrot.slane %v426_v12, 4 }
 0x650   :  { %v442_v16 = vrot.slane %v440_v13, 4  ;;  %v433_v18 = vadd.f32 %v431_v17, %v1420_v32 }
 0x652   :  { %443 = vrot.lane.b32.xlu0 %v442_v16, %s1318_s3  ;;  %v1044_v19 = vmul.f32 -1.442695, %v433_v18 }
 0x654   :  { %1279 = vpow2.f32 %v1044_v19 }
 0x65e   :  { %v1280_v20 = vpop.eup %1279 }
 0x65f   :  { %v437_v21 = vadd.f32 1.0, %v1280_v20 }
 0x661   :  { %1281 = vrcp.f32 %v437_v21 }
 0x66b   :  { %v1282_v22 = vpop.eup %1281 }
 0x66c   :  { %v453_v31 = vsub.f32 1.0, %v1282_v22  ;;  %v461_v36 = vmul.f32 %v1282_v22, %v459_v34 }
 0x6c4   :  { %v444_v23 = vpop.permute.xlu0 %443 }
 0x6c5   :  { %v446_v25 = vmul.f32 %v1282_v22, %v444_v23 }
 0x6c7   :  { %448 = vrot.lane.b32.xlu1 %v446_v25, %s1318_s3 }
 0x739   :  { %v449_v26 = vpop.permute.xlu1 %448 }
 0x73a   :  { %v451_v29 = vadd.f32 %v449_v26, %v1422_v33 }
 0x73c   :  { %1283 = vtanh.f32 %v451_v29 }
 0x746   :  { %v1284_v30 = vpop.eup %1283 }
 0x747   :  { %455 = vrot.lane.b32.xlu0 %v1284_v30, %s1319_s4 }
 0x7b9   :  { %v456_v35 = vpop.permute.xlu0 %455 }
 0x7ba   :  { %v458_v37 = vmul.f32 %v456_v35, %v453_v31 }
 0x7bc   :  { %v1465_v38 = vadd.f32 %v461_v36, %v458_v37 }
 0x7be   :  { %v470_v39 = vrot.slane %v1465_v38, 4 }
 0x7c0   :  { %471 = vrot.lane.b32.xlu1 %v470_v39, %s1319_s4 }
 0x832   :  { %v472_v40 = vpop.permute.xlu1 %471 }
 0x833   :  { %1160 = vmatmul.mubr.msk.f32.vlgmr.msra.gmra.mrb[4].mxu0 %vm32_vm1, %v472_v40 }
 0x834   :  { %1246 = vmatpush3.bf16.msra.mxu0 %v1371_v9  ;;  %1181 = vmatprep.mubr.msk.f32.mxu0 %vm1316_vm0, %v1317_v4 }
 0x835   :  { %1247 = vmatprep.subr.bf16.mxu0 %v1315_v0 }
 0x838   :  { %1249 = vmatpush3.bf16.msra.mxu0 %v1384_v14 }
 0x839   :  { %1256 = vmatprep.subr.bf16.mxu0 %v1315_v0 }
 0x906   :  { %v541_v41 = vpop.f32.mrb[4].mxu0 }
 0x907   :  { %v555_v42 = vadd.f32 %v541_v41, %v1413_v24  ;;  %v1161_v43 = vpop.f32.mrb[5].mxu0  ;;  %v546_v45 = vrot.slane %v541_v41, 2 }
 0x909   :  { %v557_v44 = vrot.slane %v555_v42, 2  ;;  %v548_v46 = vadd.f32 %v546_v45, %v1420_v32  ;;  %v574_v32 = vrot.slane %v1465_v38, 6 }
 0x90b   :  { %558 = vrot.lane.b32.xlu0 %v557_v44, %s1318_s3  ;;  %v1047_v47 = vmul.f32 -1.442695, %v548_v46 }
 0x90d   :  { %1285 = vpow2.f32 %v1047_v47 }
 0x917   :  { %v1286_v48 = vpop.eup %1285 }
 0x918   :  { %v552_v49 = vadd.f32 1.0, %v1286_v48 }
 0x91a   :  { %1287 = vrcp.f32 %v552_v49 }
 0x924   :  { %v1288_v50 = vpop.eup %1287 }
 0x925   :  { %v568_v56 = vsub.f32 1.0, %v1288_v50  ;;  %v576_v58 = vmul.f32 %v1288_v50, %v574_v32 }
 0x97d   :  { %v559_v51 = vpop.permute.xlu0 %558 }
 0x97e   :  { %v561_v52 = vmul.f32 %v1288_v50, %v559_v51 }
 0x980   :  { %563 = vrot.lane.b32.xlu1 %v561_v52, %s1318_s3 }
 0x9f2   :  { %v564_v53 = vpop.permute.xlu1 %563 }
 0x9f3   :  { %v566_v54 = vadd.f32 %v564_v53, %v1422_v33 }
 0x9f5   :  { %1289 = vtanh.f32 %v566_v54 }
 0x9ff   :  { %v1290_v55 = vpop.eup %1289 }
 0xa00   :  { %570 = vrot.lane.b32.xlu0 %v1290_v55, %s1319_s4 }
 0xa72   :  { %v571_v57 = vpop.permute.xlu0 %570 }
 0xa73   :  { %v573_v59 = vmul.f32 %v571_v57, %v568_v56 }
 0xa75   :  { %v1483_v60 = vadd.f32 %v576_v58, %v573_v59 }
 0xa77   :  { %v585_v61 = vrot.slane %v1483_v60, 6 }
 0xa79   :  { %586 = vrot.lane.b32.xlu1 %v585_v61, %s1319_s4 }
 0xaeb   :  { %v587_v62 = vpop.permute.xlu1 %586 }
 0xaec   :  { %1171 = vmatmul.mubr.msk.f32.vlgmr.msra.gmra.mrb[4].mxu1 %vm32_vm1, %v587_v62 }
 0xaed   :  { %1252 = vmatpush3.bf16.msra.mxu1 %v1371_v9  ;;  %1192 = vmatprep.mubr.msk.f32.mxu1 %vm1316_vm0, %v1317_v4 }
 0xaee   :  { %1253 = vmatprep.subr.bf16.mxu1 %v1315_v0 }
 0xaf1   :  { %1255 = vmatpush3.bf16.msra.mxu1 %v1384_v14 }
 0xbbf   :  { %v656_v33 = vpop.f32.mrb[4].mxu1 }
 0xbc0   :  { %v667_v63 = vadd.f32 %v656_v33, %v1413_v24  ;;  %v1172_v1 = vpop.f32.mrb[5].mxu1  ;;  %v660_v2 = vadd.f32 %v656_v33, %v1415_v27 }
 0xbc2   :  { %669 = vrot.lane.b32.xlu0 %v667_v63, %s1318_s3  ;;  %v1050_v3 = vmul.f32 -1.442695, %v660_v2 }
 0xbc4   :  { %1291 = vpow2.f32 %v1050_v3 }
 0xbce   :  { %v1292_v5 = vpop.eup %1291 }
 0xbcf   :  { %v664_v6 = vadd.f32 1.0, %v1292_v5 }
 0xbd1   :  { %1293 = vrcp.f32 %v664_v6 }
 0xbdb   :  { %v1294_v7 = vpop.eup %1293 }
 0xbdc   :  { %v679_v16 = vsub.f32 1.0, %v1294_v7  ;;  %v686_v18 = vmul.f32 %v1294_v7, %v585_v61 }
 0xc34   :  { %v670_v10 = vpop.permute.xlu0 %669 }
 0xc35   :  { %v672_v11 = vmul.f32 %v1294_v7, %v670_v10 }
 0xc37   :  { %674 = vrot.lane.b32.xlu1 %v672_v11, %s1318_s3 }
 0xca9   :  { %v675_v12 = vpop.permute.xlu1 %674 }
 0xcaa   :  { %v677_v13 = vadd.f32 %v675_v12, %v1417_v28 }
 0xcac   :  { %1295 = vtanh.f32 %v677_v13 }
 0xcb6   :  { %v1296_v15 = vpop.eup %1295 }
 0xcb7   :  { %681 = vrot.lane.b32.xlu0 %v1296_v15, %s1319_s4 }
 0xd29   :  { %v682_v17 = vpop.permute.xlu0 %681 }
 0xd2a   :  { %v684_v19 = vmul.f32 %v682_v17, %v679_v16 }
 0xd2c   :  { %v687_v20 = vadd.f32 %v686_v18, %v684_v19 }
 0xd2e   :  { %689 = vrot.lane.b32.xlu1 %v687_v20, %s1319_s4  ;;  %v795_v39 = vrot.slane %v687_v20, 6 }
 0xda0   :  { %v690_v21 = vpop.permute.xlu1 %689 }
 0xda1   :  { %1051 = vst.msk [vmem:[%s1573_s5 + $0x8] sm:$0x3] %vm241_vm2, %v690_v21  ;;  %1182 = vmatmul.mubr.msk.f32.vlgmr.msra.gmra.mrb[6].mxu0 %vm32_vm1, %v690_v21 }
 0xda2   :  { %1258 = vmatpush3.bf16.msra.mxu0 %v1371_v9  ;;  %1203 = vmatprep.mubr.msk.f32.mxu0 %vm1316_vm0, %v1317_v4 }
 0xda3   :  { %1259 = vmatprep.subr.bf16.mxu0 %v1315_v0 }
 0xda6   :  { %1261 = vmatpush3.bf16.msra.mxu0 %v1384_v14 }
 0xe74   :  { %v762_v22 = vpop.f32.mrb[6].mxu0 }
 0xe75   :  { %v776_v23 = vadd.f32 %v762_v22, %v1413_v24  ;;  %v1183_v25 = vpop.f32.mrb[7].mxu0  ;;  %v767_v29 = vrot.slane %v762_v22, 6 }
 0xe77   :  { %v778_v26 = vrot.slane %v776_v23, 6  ;;  %v769_v30 = vadd.f32 %v767_v29, %v1415_v27 }
 0xe79   :  { %779 = vrot.lane.b32.xlu0 %v778_v26, %s1318_s3  ;;  %v1053_v31 = vmul.f32 -1.442695, %v769_v30 }
 0xe7b   :  { %1297 = vpow2.f32 %v1053_v31 }
 0xe85   :  { %v1298_v9 = vpop.eup %1297 }
 0xe86   :  { %v773_v34 = vadd.f32 1.0, %v1298_v9 }
 0xe88   :  { %1299 = vrcp.f32 %v773_v34 }
 0xe92   :  { %v1300_v4 = vpop.eup %1299 }
 0xe93   :  { %v789_v40 = vsub.f32 1.0, %v1300_v4  ;;  %v797_v43 = vmul.f32 %v1300_v4, %v795_v39 }
 0xeeb   :  { %v780_v35 = vpop.permute.xlu0 %779 }
 0xeec   :  { %v782_v0 = vmul.f32 %v1300_v4, %v780_v35 }
 0xeee   :  { %784 = vrot.lane.b32.xlu1 %v782_v0, %s1318_s3 }
 0xf60   :  { %v785_v14 = vpop.permute.xlu1 %784 }
 0xf61   :  { %v787_v36 = vadd.f32 %v785_v14, %v1417_v28 }
 0xf63   :  { %1301 = vtanh.f32 %v787_v36 }
 0xf6d   :  { %v1302_v37 = vpop.eup %1301 }
 0xf6e   :  { %791 = vrot.lane.b32.xlu0 %v1302_v37, %s1319_s4 }
 0xfe0   :  { %v792_v41 = vpop.permute.xlu0 %791 }
 0xfe1   :  { %v794_v42 = vmul.f32 %v792_v41, %v789_v40 }
 0xfe3   :  { %v1516_v44 = vadd.f32 %v797_v43, %v794_v42 }
 0xfe5   :  { %v805_v45 = vrot.slane %v1516_v44, 2  ;;  %v909_v33 = vrot.slane %v1516_v44, 6 }
 0xfe7   :  { %806 = vrot.lane.b32.xlu1 %v805_v45, %s1319_s4 }
0x1059   :  { %v807_v46 = vpop.permute.xlu1 %806 }
0x105a   :  { %1193 = vmatmul.mubr.msk.f32.vlgmr.msra.gmra.mrb[6].mxu1 %vm32_vm1, %v807_v46 }
0x112d   :  { %v876_v47 = vpop.f32.mrb[6].mxu1 }
0x112e   :  { %v890_v48 = vadd.f32 %v876_v47, %v1413_v24  ;;  %v1194_v49 = vpop.f32.mrb[7].mxu1  ;;  %v881_v51 = vrot.slane %v876_v47, 4 }
0x1130   :  { %v892_v50 = vrot.slane %v890_v48, 4  ;;  %v883_v52 = vadd.f32 %v881_v51, %v1415_v27 }
0x1132   :  { %893 = vrot.lane.b32.xlu0 %v892_v50, %s1318_s3  ;;  %v1056_v53 = vmul.f32 -1.442695, %v883_v52 }
0x1134   :  { %1303 = vpow2.f32 %v1056_v53 }
0x113e   :  { %v1304_v54 = vpop.eup %1303 }
0x113f   :  { %v887_v55 = vadd.f32 1.0, %v1304_v54 }
0x1141   :  { %1305 = vrcp.f32 %v887_v55 }
0x114b   :  { %v1306_v56 = vpop.eup %1305 }
0x114c   :  { %v903_v62 = vsub.f32 1.0, %v1306_v56  ;;  %v911_v1 = vmul.f32 %v1306_v56, %v909_v33 }
0x11a4   :  { %v894_v32 = vpop.permute.xlu0 %893 }
0x11a5   :  { %v896_v57 = vmul.f32 %v1306_v56, %v894_v32 }
0x11a7   :  { %898 = vrot.lane.b32.xlu1 %v896_v57, %s1318_s3 }
0x1219   :  { %v899_v58 = vpop.permute.xlu1 %898 }
0x121a   :  { %v901_v59 = vadd.f32 %v899_v58, %v1417_v28 }
0x121c   :  { %1307 = vtanh.f32 %v901_v59 }
0x1226   :  { %v1308_v61 = vpop.eup %1307 }
0x1227   :  { %905 = vrot.lane.b32.xlu0 %v1308_v61, %s1319_s4 }
0x1299   :  { %v906_v63 = vpop.permute.xlu0 %905 }
0x129a   :  { %v908_v2 = vmul.f32 %v906_v63, %v903_v62 }
0x129c   :  { %v912_v3 = vadd.f32 %v911_v1, %v908_v2 }
0x129e   :  { %v919_v5 = vrot.slane %v912_v3, 4  ;;  %v1023_v25 = vrot.slane %v912_v3, 6 }
0x12a0   :  { %920 = vrot.lane.b32.xlu1 %v919_v5, %s1319_s4 }
0x1312   :  { %v921_v6 = vpop.permute.xlu1 %920 }
0x1313   :  { %1204 = vmatmul.mubr.msk.f32.vlgmr.msra.gmra.mrb[8].mxu0 %vm32_vm1, %v921_v6 }
0x13e6   :  { %v990_v7 = vpop.f32.mrb[8].mxu0 }
0x13e7   :  { %v1004_v10 = vadd.f32 %v990_v7, %v1413_v24  ;;  %v1205_v11 = vpop.f32.mrb[9].mxu0  ;;  %v995_v13 = vrot.slane %v990_v7, 2 }
0x13e9   :  { %v1006_v12 = vrot.slane %v1004_v10, 2  ;;  %v997_v15 = vadd.f32 %v995_v13, %v1415_v27 }
0x13eb   :  { %1007 = vrot.lane.b32.xlu0 %v1006_v12, %s1318_s3  ;;  %v1059_v16 = vmul.f32 -1.442695, %v997_v15 }
0x13ed   :  { %1309 = vpow2.f32 %v1059_v16 }
0x13f7   :  { %v1310_v17 = vpop.eup %1309 }
0x13f8   :  { %v1001_v18 = vadd.f32 1.0, %v1310_v17 }
0x13fa   :  { %1311 = vrcp.f32 %v1001_v18 }
0x1404   :  { %v1312_v19 = vpop.eup %1311 }
0x1405   :  { %v1025_v29 = vmul.f32 %v1312_v19, %v1023_v25 }
0x145d   :  { %v1008_v20 = vpop.permute.xlu0 %1007 }
0x145e   :  { %v1010_v21 = vmul.f32 %v1312_v19, %v1008_v20 }
0x1460   :  { %1012 = vrot.lane.b32.xlu1 %v1010_v21, %s1318_s3 }
0x1464   :  { %349 = vrot.lane.b32.xlu1 %v1447_v8, %s1319_s4 }
0x1468   :  { %579 = vrot.lane.b32.xlu1 %v1483_v60, %s1319_s4 }
0x146c   :  { %914 = vrot.lane.b32.xlu1 %v912_v3, %s1319_s4 }
0x14d2   :  { %v1013_v24 = vpop.permute.xlu1 %1012 }
0x14d3   :  { %v1015_v27 = vadd.f32 %v1013_v24, %v1417_v28  ;;  %v1017_v28 = vsub.f32 1.0, %v1312_v19 }
0x14d5   :  { %1313 = vtanh.f32 %v1015_v27 }
0x14d6   :  { %v350_v22 = vpop.permute.xlu1 %349 }
0x14d7   :  { %1042 = vst.msk [vmem:[%s1573_s5] sm:$0xc] %vm353_vm3, %v350_v22 }
0x14da   :  { %v580_v23 = vpop.permute.xlu1 %579 }
0x14db   :  { %1048 = vst.msk [vmem:[%s1573_s5] sm:$0xc0] %vm583_vm4, %v580_v23 }
0x14de   :  { %v915_v8 = vpop.permute.xlu1 %914 }
0x14df   :  { %v1314_v60 = vpop.eup %1313  ;;  %1057 = vst.msk [vmem:[%s1573_s5 + $0x8] sm:$0x30] %vm468_vm5, %v915_v8 }
0x14e0   :  { %1019 = vrot.lane.b32.xlu0 %v1314_v60, %s1319_s4 }
0x14e4   :  { %464 = vrot.lane.b32.xlu0 %v1465_v38, %s1319_s4 }
0x14e8   :  { %800 = vrot.lane.b32.xlu0 %v1516_v44, %s1319_s4 }
0x1552   :  { %v1020_v26 = vpop.permute.xlu0 %1019 }
0x1553   :  { %v1022_v30 = vmul.f32 %v1020_v26, %v1017_v28 }
0x1555   :  { %v1026_v31 = vadd.f32 %v1025_v29, %v1022_v30 }
0x1556   :  { %v465_v9 = vpop.permute.xlu0 %464 }
0x1557   :  { %1045 = vst.msk [vmem:[%s1573_s5] sm:$0x30] %vm468_vm5, %v465_v9  ;;  %1028 = vrot.lane.b32.xlu0 %v1026_v31, %s1319_s4 }
0x155a   :  { %v801_v34 = vpop.permute.xlu0 %800 }
0x155b   :  { %1054 = vst.msk [vmem:[%s1573_s5 + $0x8] sm:$0xc] %vm353_vm3, %v801_v34 }
0x15c9   :  { %v1029_v38 = vpop.permute.xlu0 %1028 }
0x15ca   :  { %1060 = vst.msk [vmem:[%s1573_s5 + $0x8] sm:$0xc0] %vm583_vm4, %v1029_v38 }

</bundles_post_ra>
